<compile_context>
chip_gen: v6e
topology: v6e:2x2x1
jax: 0.10.0
libtpu: 0.0.40
codegen_flags: <defaults>
</compile_context>

<pallas_src>
import functools

import jax
import jax.numpy as jnp
from jax.experimental import pallas as pl
from jax.experimental.pallas import tpu as pltpu


def _fake_tf_attn_kernel(x_ref, wk_ref, wq_ref, bk_ref, bq_ref, pos_ref,
                         wout_ref, bout_ref, o_ref, attn_ref, *,
                         N, H, scale, pos_chunk):
    """One batch element per grid step. Grid = (B,)."""
    x = x_ref[0]                                                    # (T, D)
    T, D = x.shape

    # ---- full-width input projections (one MXU matmul each; unused qkv 'v' chunk never
    #      touched). Softmax scale folded into q. ----
    k = jnp.dot(x, wk_ref[...], preferred_element_type=jnp.float32) + bk_ref[...]   # (T, D)
    q = jnp.dot(x, wq_ref[...], preferred_element_type=jnp.float32) + bq_ref[...]   # (T, D)
    q = q * scale

    # ---- positional value on the VPU: v[t, e] = sum_d x[t, d] * pos[t, d, e].
    #      Chunked over the contraction axis d (static chunks) to bound the
    #      (T, chunk, D) intermediate at large D. ----
    v = jnp.zeros((T, D), jnp.float32)
    for c0 in range(0, D, pos_chunk):
        xs = x[:, c0:c0 + pos_chunk]                                # (T, C)
        ps = pos_ref[:, c0:c0 + pos_chunk, :]                       # (T, C, D)
        v = v + jnp.sum(xs[:, :, None] * ps, axis=1)                # (T, D)

    # ---- per-head scaled dot-product attention (static head loop, static lane slices).
    ctx_cols = []
    for n in range(N):
        qh = q[:, n * H:(n + 1) * H]                                # (T, H)
        kh = k[:, n * H:(n + 1) * H]                                # (T, H)
        vh = v[:, n * H:(n + 1) * H]                                # (T, H)
        s = jax.lax.dot_general(
            qh, kh, dimension_numbers=(((1,), (1,)), ((), ())),
            preferred_element_type=jnp.float32)                     # (T, T)
        s = s - jnp.max(s, axis=-1, keepdims=True)
        p = jnp.exp(s)
        p = p / jnp.sum(p, axis=-1, keepdims=True)                  # exact softmax
        attn_ref[0, n] = p.astype(attn_ref.dtype)
        ctx_cols.append(jnp.dot(p, vh, preferred_element_type=jnp.float32))  # (T, H)

    ctx = jnp.concatenate(ctx_cols, axis=-1)                        # (T, D)

    # ---- single full-width output projection. ----
    out = jnp.dot(ctx, wout_ref[...], preferred_element_type=jnp.float32) + bout_ref[...]
    o_ref[0] = out.astype(o_ref.dtype)


def fake_tf_attention(x, proj_weight, proj_bias, positional_linear, proj_w, proj_b, *, N):
    """x: (B, T, D). proj_weight: (3D, D). proj_bias: (3D,).
    positional_linear: (L>=T, D, D). proj_w: (D, D). proj_b: (D,).
    Returns (out (B, T, D), attn (B, N, T, T))."""
    B, T, D = x.shape
    assert D % N == 0
    H = D // N
    scale = float(H) ** (-0.5)

    # Wrapper-side layout plumbing (cheap (D,D) transposes / bias reshapes only; in
    # production these would be cached with the parameters).
    wk = jnp.transpose(proj_weight[0 * D:1 * D])     # (D, D): k chunk, pre-transposed
    wq = jnp.transpose(proj_weight[2 * D:3 * D])     # (D, D): q chunk, pre-transposed
    bk = proj_bias[0 * D:1 * D].reshape(1, D)
    bq = proj_bias[2 * D:3 * D].reshape(1, D)
    pos = positional_linear[:T]                      # (T, D, D), untransposed
    wout = jnp.transpose(proj_w)                     # (D, D)
    bout = proj_b.reshape(1, D)

    pos_chunk = 128 if (D > 128 and D % 128 == 0) else D

    kernel = functools.partial(_fake_tf_attn_kernel,
                               N=N, H=H, scale=scale, pos_chunk=pos_chunk)

    out, attn = pl.pallas_call(
        kernel,
        out_shape=(
            jax.ShapeDtypeStruct((B, T, D), x.dtype),
            jax.ShapeDtypeStruct((B, N, T, T), jnp.float32),
        ),
        grid_spec=pltpu.PrefetchScalarGridSpec(
            num_scalar_prefetch=0,
            grid=(B,),
            in_specs=[
                pl.BlockSpec((1, T, D), lambda b: (b, 0, 0)),        # x (per batch)
                pl.BlockSpec((D, D), lambda b: (0, 0)),              # wk (loaded once)
                pl.BlockSpec((D, D), lambda b: (0, 0)),              # wq (loaded once)
                pl.BlockSpec((1, D), lambda b: (0, 0)),              # bk
                pl.BlockSpec((1, D), lambda b: (0, 0)),              # bq
                pl.BlockSpec((T, D, D), lambda b: (0, 0, 0)),        # pos (loaded once)
                pl.BlockSpec((D, D), lambda b: (0, 0)),              # wout (loaded once)
                pl.BlockSpec((1, D), lambda b: (0, 0)),              # bout
            ],
            out_specs=[
                pl.BlockSpec((1, T, D), lambda b: (b, 0, 0)),        # out (per batch)
                pl.BlockSpec((1, N, T, T), lambda b: (b, 0, 0, 0)),  # attn (per batch)
            ],
        ),
        compiler_params=pltpu.CompilerParams(
            dimension_semantics=("parallel",)),
    )(x, wk, wq, bk, bq, pos, wout, bout)
    return out, attn


def _reference(x, proj_weight, proj_bias, pos, proj_w, proj_b, *, N):
    """Pure-JAX replica of FakeTFAttention.forward (case 2, q is k is v, eval mode)."""
    B, T, D = x.shape
    H = D // N
    scale = float(H) ** (-0.5)
    qkv = x @ proj_weight.T + proj_bias
    k = qkv[..., 0 * D:1 * D]
    q = qkv[..., 2 * D:3 * D]
    v = jnp.einsum('btd,tde->bte', x, pos[:T])
    qh = q.reshape(B, T, N, H).transpose(0, 2, 1, 3)
    kh = k.reshape(B, T, N, H).transpose(0, 2, 1, 3)
    vh = v.reshape(B, T, N, H).transpose(0, 2, 1, 3)
    attn = jnp.einsum('bnth,bnsh->bnts', qh, kh) * scale
    attn = jax.nn.softmax(attn, axis=-1)
    ctx = jnp.einsum('bnts,bnsh->bnth', attn, vh)
    ctx = ctx.transpose(0, 2, 1, 3).reshape(B, T, D)
    out = ctx @ proj_w.T + proj_b
    return out, attn


if __name__ == "__main__":
    B, T, D, N = 2, 8, 32, 4          # L(=8) >= T required by positional_linear
    L = 8

    key = jax.random.PRNGKey(0)
    kx, k1, k2, k3, k4, k5 = jax.random.split(key, 6)

    x = jax.random.normal(kx, (B, T, D), dtype=jnp.float32)

    # proj_weight (3D, D): xavier-uniform-like deterministic init
    bound_qkv = (6.0 / (3 * D + D)) ** 0.5
    proj_weight = jax.random.uniform(k1, (3 * D, D), jnp.float32,
                                     minval=-bound_qkv, maxval=bound_qkv)
    # module inits proj_bias to 0; use non-zero values here to exercise the bias path
    proj_bias = 0.1 * jax.random.normal(k5, (3 * D,), jnp.float32)

    # positional_linear (L, D, D)
    positional_linear = jax.random.normal(k2, (L, D, D), jnp.float32) * 0.1

    # self.proj = nn.Linear(D, D)
    bound_o = 1.0 / (D ** 0.5)
    proj_w = jax.random.uniform(k3, (D, D), jnp.float32, minval=-bound_o, maxval=bound_o)
    proj_b = jax.random.uniform(k4, (D,), jnp.float32, minval=-bound_o, maxval=bound_o)

    out, attn = fake_tf_attention(x, proj_weight, proj_bias, positional_linear,
                                  proj_w, proj_b, N=N)
    jax.block_until_ready((out, attn))

    ref_out, ref_attn = _reference(x, proj_weight, proj_bias, positional_linear,
                                   proj_w, proj_b, N=N)
    assert jnp.allclose(out, ref_out, atol=1e-3, rtol=1e-3), "output mismatch"
    assert jnp.allclose(attn, ref_attn, atol=1e-3, rtol=1e-3), "attn mismatch"

    print("KERNEL_OK")
</pallas_src>

<mosaic_0001>
module attributes {stable_mosaic.version = 11 : i64} {
  func.func @_fake_tf_attn_kernel(%arg0: i32, %arg1: memref<1x8x32xf32, #tpu.memory_space<vmem>>, %arg2: memref<32x32xf32, #tpu.memory_space<vmem>>, %arg3: memref<32x32xf32, #tpu.memory_space<vmem>>, %arg4: memref<1x32xf32, #tpu.memory_space<vmem>>, %arg5: memref<1x32xf32, #tpu.memory_space<vmem>>, %arg6: memref<8x32x32xf32, #tpu.memory_space<vmem>>, %arg7: memref<32x32xf32, #tpu.memory_space<vmem>>, %arg8: memref<1x32xf32, #tpu.memory_space<vmem>>, %arg9: memref<1x8x32xf32, #tpu.memory_space<vmem>>, %arg10: memref<1x4x8x8xf32, #tpu.memory_space<vmem>>) attributes {dimension_semantics = [#tpu.dimension_semantics<parallel>], iteration_bounds = array<i64: 2>, scalar_prefetch = 0 : i64, scratch_operands = 0 : i64, tpu.core_type = #tpu.core_type<tc>, window_params = [{transform_indices = @transform_0, window_bounds = array<i64: 1, 8, 32>}, {pipeline_mode = #tpu.pipeline_mode<synchronous>, transform_indices = @transform_1, window_bounds = array<i64: 32, 32>}, {pipeline_mode = #tpu.pipeline_mode<synchronous>, transform_indices = @transform_2, window_bounds = array<i64: 32, 32>}, {pipeline_mode = #tpu.pipeline_mode<synchronous>, transform_indices = @transform_3, window_bounds = array<i64: 1, 32>}, {pipeline_mode = #tpu.pipeline_mode<synchronous>, transform_indices = @transform_4, window_bounds = array<i64: 1, 32>}, {pipeline_mode = #tpu.pipeline_mode<synchronous>, transform_indices = @transform_5, window_bounds = array<i64: 8, 32, 32>}, {pipeline_mode = #tpu.pipeline_mode<synchronous>, transform_indices = @transform_6, window_bounds = array<i64: 32, 32>}, {pipeline_mode = #tpu.pipeline_mode<synchronous>, transform_indices = @transform_7, window_bounds = array<i64: 1, 32>}, {transform_indices = @transform_8, window_bounds = array<i64: 1, 8, 32>}, {transform_indices = @transform_9, window_bounds = array<i64: 1, 4, 8, 8>}]} {
    %c0 = arith.constant 0 : index
    %c0_0 = arith.constant 0 : index
    %c0_1 = arith.constant 0 : index
    %0 = vector.load %arg1[%c0, %c0_0, %c0_1] : memref<1x8x32xf32, #tpu.memory_space<vmem>>, vector<1x8x32xf32>
    %1 = vector.shape_cast %0 : vector<1x8x32xf32> to vector<8x32xf32>
    %c0_2 = arith.constant 0 : index
    %c0_3 = arith.constant 0 : index
    %2 = vector.load %arg2[%c0_2, %c0_3] : memref<32x32xf32, #tpu.memory_space<vmem>>, vector<32x32xf32>
    %cst = arith.constant dense<0.000000e+00> : vector<8x32xf32>
    %3 = tpu.matmul %1, %2, %cst {dimension_numbers = #tpu.dot_dimension_numbers<[1], [0], [0], [1], [0, 0, 1, 1], [], []>} : vector<8x32xf32>, vector<32x32xf32>, vector<8x32xf32> -> vector<8x32xf32>
    %c0_4 = arith.constant 0 : index
    %c0_5 = arith.constant 0 : index
    %4 = vector.load %arg4[%c0_4, %c0_5] : memref<1x32xf32, #tpu.memory_space<vmem>>, vector<1x32xf32>
    %5 = vector.broadcast %4 : vector<1x32xf32> to vector<8x32xf32>
    %6 = arith.addf %3, %5 : vector<8x32xf32>
    %c0_6 = arith.constant 0 : index
    %c0_7 = arith.constant 0 : index
    %7 = vector.load %arg3[%c0_6, %c0_7] : memref<32x32xf32, #tpu.memory_space<vmem>>, vector<32x32xf32>
    %cst_8 = arith.constant dense<0.000000e+00> : vector<8x32xf32>
    %8 = tpu.matmul %1, %7, %cst_8 {dimension_numbers = #tpu.dot_dimension_numbers<[1], [0], [0], [1], [0, 0, 1, 1], [], []>} : vector<8x32xf32>, vector<32x32xf32>, vector<8x32xf32> -> vector<8x32xf32>
    %c0_9 = arith.constant 0 : index
    %c0_10 = arith.constant 0 : index
    %9 = vector.load %arg5[%c0_9, %c0_10] : memref<1x32xf32, #tpu.memory_space<vmem>>, vector<1x32xf32>
    %10 = vector.broadcast %9 : vector<1x32xf32> to vector<8x32xf32>
    %11 = arith.addf %8, %10 : vector<8x32xf32>
    %cst_11 = arith.constant 0.353553385 : f32
    %12 = vector.broadcast %cst_11 : f32 to vector<8x32xf32>
    %13 = arith.mulf %11, %12 : vector<8x32xf32>
    %cst_12 = arith.constant 0.000000e+00 : f32
    %14 = vector.broadcast %cst_12 : f32 to vector<8x32xf32>
    %c0_13 = arith.constant 0 : index
    %c0_14 = arith.constant 0 : index
    %c0_15 = arith.constant 0 : index
    %15 = vector.load %arg6[%c0_13, %c0_14, %c0_15] : memref<8x32x32xf32, #tpu.memory_space<vmem>>, vector<8x32x32xf32>
    %16 = vector.shape_cast %1 : vector<8x32xf32> to vector<8x32x1xf32>
    %17 = vector.broadcast %16 : vector<8x32x1xf32> to vector<8x32x32xf32>
    %18 = arith.mulf %17, %15 : vector<8x32x32xf32>
    %cst_16 = arith.constant dense<0.000000e+00> : vector<8x32xf32>
    %19 = vector.multi_reduction <add>, %18, %cst_16 [1] : vector<8x32x32xf32> to vector<8x32xf32>
    %20 = arith.addf %14, %19 : vector<8x32xf32>
    %21 = vector.extract_strided_slice %13 {offsets = [0, 0], sizes = [8, 8], strides = [1, 1]} : vector<8x32xf32> to vector<8x8xf32>
    %22 = vector.extract_strided_slice %6 {offsets = [0, 0], sizes = [8, 8], strides = [1, 1]} : vector<8x32xf32> to vector<8x8xf32>
    %23 = vector.extract_strided_slice %20 {offsets = [0, 0], sizes = [8, 8], strides = [1, 1]} : vector<8x32xf32> to vector<8x8xf32>
    %cst_17 = arith.constant dense<0.000000e+00> : vector<8x8xf32>
    %24 = tpu.matmul %21, %22, %cst_17 {dimension_numbers = #tpu.dot_dimension_numbers<[1], [1], [0], [0], [0, 0, 1, 0], [], []>} : vector<8x8xf32>, vector<8x8xf32>, vector<8x8xf32> -> vector<8x8xf32>
    %cst_18 = arith.constant dense<0xFF800000> : vector<8xf32>
    %25 = vector.multi_reduction <maximumf>, %24, %cst_18 [1] : vector<8x8xf32> to vector<8xf32>
    %26 = vector.shape_cast %25 : vector<8xf32> to vector<8x1xf32>
    %27 = vector.broadcast %26 : vector<8x1xf32> to vector<8x8xf32>
    %28 = arith.subf %24, %27 : vector<8x8xf32>
    %29 = math.exp %28 : vector<8x8xf32>
    %cst_19 = arith.constant dense<0.000000e+00> : vector<8xf32>
    %30 = vector.multi_reduction <add>, %29, %cst_19 [1] : vector<8x8xf32> to vector<8xf32>
    %31 = vector.shape_cast %30 : vector<8xf32> to vector<8x1xf32>
    %32 = vector.broadcast %31 : vector<8x1xf32> to vector<8x8xf32>
    %33 = arith.divf %29, %32 : vector<8x8xf32>
    %c0_20 = arith.constant 0 : index
    %c0_21 = arith.constant 0 : index
    %c0_22 = arith.constant 0 : index
    %c0_23 = arith.constant 0 : index
    %34 = vector.load %arg10[%c0_20, %c0_21, %c0_22, %c0_23] : memref<1x4x8x8xf32, #tpu.memory_space<vmem>>, vector<1x1x8x8xf32>
    %35 = vector.shape_cast %34 : vector<1x1x8x8xf32> to vector<8x8xf32>
    %36 = vector.shape_cast %33 : vector<8x8xf32> to vector<1x1x8x8xf32>
    tpu.vector_store %arg10[%c0_20, %c0_21, %c0_22, %c0_23], %36 {strides = array<i32>} : memref<1x4x8x8xf32, #tpu.memory_space<vmem>>, vector<1x1x8x8xf32>,
    %cst_24 = arith.constant dense<0.000000e+00> : vector<8x8xf32>
    %37 = tpu.matmul %33, %23, %cst_24 {dimension_numbers = #tpu.dot_dimension_numbers<[1], [0], [0], [1], [0, 0, 1, 1], [], []>} : vector<8x8xf32>, vector<8x8xf32>, vector<8x8xf32> -> vector<8x8xf32>
    %38 = vector.extract_strided_slice %13 {offsets = [0, 8], sizes = [8, 8], strides = [1, 1]} : vector<8x32xf32> to vector<8x8xf32>
    %39 = vector.extract_strided_slice %6 {offsets = [0, 8], sizes = [8, 8], strides = [1, 1]} : vector<8x32xf32> to vector<8x8xf32>
    %40 = vector.extract_strided_slice %20 {offsets = [0, 8], sizes = [8, 8], strides = [1, 1]} : vector<8x32xf32> to vector<8x8xf32>
    %cst_25 = arith.constant dense<0.000000e+00> : vector<8x8xf32>
    %41 = tpu.matmul %38, %39, %cst_25 {dimension_numbers = #tpu.dot_dimension_numbers<[1], [1], [0], [0], [0, 0, 1, 0], [], []>} : vector<8x8xf32>, vector<8x8xf32>, vector<8x8xf32> -> vector<8x8xf32>
    %cst_26 = arith.constant dense<0xFF800000> : vector<8xf32>
    %42 = vector.multi_reduction <maximumf>, %41, %cst_26 [1] : vector<8x8xf32> to vector<8xf32>
    %43 = vector.shape_cast %42 : vector<8xf32> to vector<8x1xf32>
    %44 = vector.broadcast %43 : vector<8x1xf32> to vector<8x8xf32>
    %45 = arith.subf %41, %44 : vector<8x8xf32>
    %46 = math.exp %45 : vector<8x8xf32>
    %cst_27 = arith.constant dense<0.000000e+00> : vector<8xf32>
    %47 = vector.multi_reduction <add>, %46, %cst_27 [1] : vector<8x8xf32> to vector<8xf32>
    %48 = vector.shape_cast %47 : vector<8xf32> to vector<8x1xf32>
    %49 = vector.broadcast %48 : vector<8x1xf32> to vector<8x8xf32>
    %50 = arith.divf %46, %49 : vector<8x8xf32>
    %c0_28 = arith.constant 0 : index
    %c1 = arith.constant 1 : index
    %c0_29 = arith.constant 0 : index
    %c0_30 = arith.constant 0 : index
    %51 = vector.load %arg10[%c0_28, %c1, %c0_29, %c0_30] : memref<1x4x8x8xf32, #tpu.memory_space<vmem>>, vector<1x1x8x8xf32>
    %52 = vector.shape_cast %51 : vector<1x1x8x8xf32> to vector<8x8xf32>
    %53 = vector.shape_cast %50 : vector<8x8xf32> to vector<1x1x8x8xf32>
    tpu.vector_store %arg10[%c0_28, %c1, %c0_29, %c0_30], %53 {strides = array<i32>} : memref<1x4x8x8xf32, #tpu.memory_space<vmem>>, vector<1x1x8x8xf32>,
    %cst_31 = arith.constant dense<0.000000e+00> : vector<8x8xf32>
    %54 = tpu.matmul %50, %40, %cst_31 {dimension_numbers = #tpu.dot_dimension_numbers<[1], [0], [0], [1], [0, 0, 1, 1], [], []>} : vector<8x8xf32>, vector<8x8xf32>, vector<8x8xf32> -> vector<8x8xf32>
    %55 = vector.extract_strided_slice %13 {offsets = [0, 16], sizes = [8, 8], strides = [1, 1]} : vector<8x32xf32> to vector<8x8xf32>
    %56 = vector.extract_strided_slice %6 {offsets = [0, 16], sizes = [8, 8], strides = [1, 1]} : vector<8x32xf32> to vector<8x8xf32>
    %57 = vector.extract_strided_slice %20 {offsets = [0, 16], sizes = [8, 8], strides = [1, 1]} : vector<8x32xf32> to vector<8x8xf32>
    %cst_32 = arith.constant dense<0.000000e+00> : vector<8x8xf32>
    %58 = tpu.matmul %55, %56, %cst_32 {dimension_numbers = #tpu.dot_dimension_numbers<[1], [1], [0], [0], [0, 0, 1, 0], [], []>} : vector<8x8xf32>, vector<8x8xf32>, vector<8x8xf32> -> vector<8x8xf32>
    %cst_33 = arith.constant dense<0xFF800000> : vector<8xf32>
    %59 = vector.multi_reduction <maximumf>, %58, %cst_33 [1] : vector<8x8xf32> to vector<8xf32>
    %60 = vector.shape_cast %59 : vector<8xf32> to vector<8x1xf32>
    %61 = vector.broadcast %60 : vector<8x1xf32> to vector<8x8xf32>
    %62 = arith.subf %58, %61 : vector<8x8xf32>
    %63 = math.exp %62 : vector<8x8xf32>
    %cst_34 = arith.constant dense<0.000000e+00> : vector<8xf32>
    %64 = vector.multi_reduction <add>, %63, %cst_34 [1] : vector<8x8xf32> to vector<8xf32>
    %65 = vector.shape_cast %64 : vector<8xf32> to vector<8x1xf32>
    %66 = vector.broadcast %65 : vector<8x1xf32> to vector<8x8xf32>
    %67 = arith.divf %63, %66 : vector<8x8xf32>
    %c0_35 = arith.constant 0 : index
    %c2 = arith.constant 2 : index
    %c0_36 = arith.constant 0 : index
    %c0_37 = arith.constant 0 : index
    %68 = vector.load %arg10[%c0_35, %c2, %c0_36, %c0_37] : memref<1x4x8x8xf32, #tpu.memory_space<vmem>>, vector<1x1x8x8xf32>
    %69 = vector.shape_cast %68 : vector<1x1x8x8xf32> to vector<8x8xf32>
    %70 = vector.shape_cast %67 : vector<8x8xf32> to vector<1x1x8x8xf32>
    tpu.vector_store %arg10[%c0_35, %c2, %c0_36, %c0_37], %70 {strides = array<i32>} : memref<1x4x8x8xf32, #tpu.memory_space<vmem>>, vector<1x1x8x8xf32>,
    %cst_38 = arith.constant dense<0.000000e+00> : vector<8x8xf32>
    %71 = tpu.matmul %67, %57, %cst_38 {dimension_numbers = #tpu.dot_dimension_numbers<[1], [0], [0], [1], [0, 0, 1, 1], [], []>} : vector<8x8xf32>, vector<8x8xf32>, vector<8x8xf32> -> vector<8x8xf32>
    %72 = vector.extract_strided_slice %13 {offsets = [0, 24], sizes = [8, 8], strides = [1, 1]} : vector<8x32xf32> to vector<8x8xf32>
    %73 = vector.extract_strided_slice %6 {offsets = [0, 24], sizes = [8, 8], strides = [1, 1]} : vector<8x32xf32> to vector<8x8xf32>
    %74 = vector.extract_strided_slice %20 {offsets = [0, 24], sizes = [8, 8], strides = [1, 1]} : vector<8x32xf32> to vector<8x8xf32>
    %cst_39 = arith.constant dense<0.000000e+00> : vector<8x8xf32>
    %75 = tpu.matmul %72, %73, %cst_39 {dimension_numbers = #tpu.dot_dimension_numbers<[1], [1], [0], [0], [0, 0, 1, 0], [], []>} : vector<8x8xf32>, vector<8x8xf32>, vector<8x8xf32> -> vector<8x8xf32>
    %cst_40 = arith.constant dense<0xFF800000> : vector<8xf32>
    %76 = vector.multi_reduction <maximumf>, %75, %cst_40 [1] : vector<8x8xf32> to vector<8xf32>
    %77 = vector.shape_cast %76 : vector<8xf32> to vector<8x1xf32>
    %78 = vector.broadcast %77 : vector<8x1xf32> to vector<8x8xf32>
    %79 = arith.subf %75, %78 : vector<8x8xf32>
    %80 = math.exp %79 : vector<8x8xf32>
    %cst_41 = arith.constant dense<0.000000e+00> : vector<8xf32>
    %81 = vector.multi_reduction <add>, %80, %cst_41 [1] : vector<8x8xf32> to vector<8xf32>
    %82 = vector.shape_cast %81 : vector<8xf32> to vector<8x1xf32>
    %83 = vector.broadcast %82 : vector<8x1xf32> to vector<8x8xf32>
    %84 = arith.divf %80, %83 : vector<8x8xf32>
    %c0_42 = arith.constant 0 : index
    %c3 = arith.constant 3 : index
    %c0_43 = arith.constant 0 : index
    %c0_44 = arith.constant 0 : index
    %85 = vector.load %arg10[%c0_42, %c3, %c0_43, %c0_44] : memref<1x4x8x8xf32, #tpu.memory_space<vmem>>, vector<1x1x8x8xf32>
    %86 = vector.shape_cast %85 : vector<1x1x8x8xf32> to vector<8x8xf32>
    %87 = vector.shape_cast %84 : vector<8x8xf32> to vector<1x1x8x8xf32>
    tpu.vector_store %arg10[%c0_42, %c3, %c0_43, %c0_44], %87 {strides = array<i32>} : memref<1x4x8x8xf32, #tpu.memory_space<vmem>>, vector<1x1x8x8xf32>,
    %cst_45 = arith.constant dense<0.000000e+00> : vector<8x8xf32>
    %88 = tpu.matmul %84, %74, %cst_45 {dimension_numbers = #tpu.dot_dimension_numbers<[1], [0], [0], [1], [0, 0, 1, 1], [], []>} : vector<8x8xf32>, vector<8x8xf32>, vector<8x8xf32> -> vector<8x8xf32>
    %89 = tpu.concatenate %37, %54, %71, %88 in 1 : vector<8x8xf32>, vector<8x8xf32>, vector<8x8xf32>, vector<8x8xf32> -> vector<8x32xf32>
    %c0_46 = arith.constant 0 : index
    %c0_47 = arith.constant 0 : index
    %90 = vector.load %arg7[%c0_46, %c0_47] : memref<32x32xf32, #tpu.memory_space<vmem>>, vector<32x32xf32>
    %cst_48 = arith.constant dense<0.000000e+00> : vector<8x32xf32>
    %91 = tpu.matmul %89, %90, %cst_48 {dimension_numbers = #tpu.dot_dimension_numbers<[1], [0], [0], [1], [0, 0, 1, 1], [], []>} : vector<8x32xf32>, vector<32x32xf32>, vector<8x32xf32> -> vector<8x32xf32>
    %c0_49 = arith.constant 0 : index
    %c0_50 = arith.constant 0 : index
    %92 = vector.load %arg8[%c0_49, %c0_50] : memref<1x32xf32, #tpu.memory_space<vmem>>, vector<1x32xf32>
    %93 = vector.broadcast %92 : vector<1x32xf32> to vector<8x32xf32>
    %94 = arith.addf %91, %93 : vector<8x32xf32>
    %c0_51 = arith.constant 0 : index
    %c0_52 = arith.constant 0 : index
    %c0_53 = arith.constant 0 : index
    %95 = vector.load %arg9[%c0_51, %c0_52, %c0_53] : memref<1x8x32xf32, #tpu.memory_space<vmem>>, vector<1x8x32xf32>
    %96 = vector.shape_cast %95 : vector<1x8x32xf32> to vector<8x32xf32>
    %97 = vector.shape_cast %94 : vector<8x32xf32> to vector<1x8x32xf32>
    tpu.vector_store %arg9[%c0_51, %c0_52, %c0_53], %97 {strides = array<i32>} : memref<1x8x32xf32, #tpu.memory_space<vmem>>, vector<1x8x32xf32>,
    return
  }
  func.func @transform_0(%arg0: i32) -> (i32, i32, i32) {
    %c0_i32 = arith.constant 0 : i32
    %c0_i32_0 = arith.constant 0 : i32
    %c0_i32_1 = arith.constant 0 : i32
    return %arg0, %c0_i32, %c0_i32_0 : i32, i32, i32
  }
  func.func @transform_1(%arg0: i32) -> (i32, i32) {
    %c0_i32 = arith.constant 0 : i32
    %c0_i32_0 = arith.constant 0 : i32
    %c0_i32_1 = arith.constant 0 : i32
    return %c0_i32, %c0_i32_0 : i32, i32
  }
  func.func @transform_2(%arg0: i32) -> (i32, i32) {
    %c0_i32 = arith.constant 0 : i32
    %c0_i32_0 = arith.constant 0 : i32
    %c0_i32_1 = arith.constant 0 : i32
    return %c0_i32, %c0_i32_0 : i32, i32
  }
  func.func @transform_3(%arg0: i32) -> (i32, i32) {
    %c0_i32 = arith.constant 0 : i32
    %c0_i32_0 = arith.constant 0 : i32
    %c0_i32_1 = arith.constant 0 : i32
    return %c0_i32, %c0_i32_0 : i32, i32
  }
  func.func @transform_4(%arg0: i32) -> (i32, i32) {
    %c0_i32 = arith.constant 0 : i32
    %c0_i32_0 = arith.constant 0 : i32
    %c0_i32_1 = arith.constant 0 : i32
    return %c0_i32, %c0_i32_0 : i32, i32
  }
  func.func @transform_5(%arg0: i32) -> (i32, i32, i32) {
    %c0_i32 = arith.constant 0 : i32
    %c0_i32_0 = arith.constant 0 : i32
    %c0_i32_1 = arith.constant 0 : i32
    %c0_i32_2 = arith.constant 0 : i32
    return %c0_i32, %c0_i32_0, %c0_i32_1 : i32, i32, i32
  }
  func.func @transform_6(%arg0: i32) -> (i32, i32) {
    %c0_i32 = arith.constant 0 : i32
    %c0_i32_0 = arith.constant 0 : i32
    %c0_i32_1 = arith.constant 0 : i32
    return %c0_i32, %c0_i32_0 : i32, i32
  }
  func.func @transform_7(%arg0: i32) -> (i32, i32) {
    %c0_i32 = arith.constant 0 : i32
    %c0_i32_0 = arith.constant 0 : i32
    %c0_i32_1 = arith.constant 0 : i32
    return %c0_i32, %c0_i32_0 : i32, i32
  }
  func.func @transform_8(%arg0: i32) -> (i32, i32, i32) {
    %c0_i32 = arith.constant 0 : i32
    %c0_i32_0 = arith.constant 0 : i32
    %c0_i32_1 = arith.constant 0 : i32
    return %arg0, %c0_i32, %c0_i32_0 : i32, i32, i32
  }
  func.func @transform_9(%arg0: i32) -> (i32, i32, i32, i32) {
    %c0_i32 = arith.constant 0 : i32
    %c0_i32_0 = arith.constant 0 : i32
    %c0_i32_1 = arith.constant 0 : i32
    %c0_i32_2 = arith.constant 0 : i32
    return %arg0, %c0_i32, %c0_i32_0, %c0_i32_1 : i32, i32, i32, i32
  }
}

</mosaic_0001>

<bundles_post_ra>
// kernel: tpu_custom_call.1
= control target key start
LH: loop header
LB: loop body
LE: loop exit
PB: predicated region body
PF: predicated region fallthrough
CT: control target
= control target key end

     0   :  { %s2903_s0 = inlined_call_operand.hbm [shape: f32[2,8,32], index: 0, kind: input, shape index: {}]   ;;  %s2904_s1 = inlined_call_operand.hbm [shape: f32[32,32], index: 1, kind: input, shape index: {}]   ;;  %s2905_s2 = inlined_call_operand.hbm [shape: f32[32,32], index: 2, kind: input, shape index: {}]   ;;  %s2906_s3 = inlined_call_operand.vmem [shape: f32[1,32], index: 3, kind: input, shape index: {}]   ;;  %s2907_s4 = inlined_call_operand.vmem [shape: f32[1,32], index: 4, kind: input, shape index: {}]   ;;  %s2908_s5 = inlined_call_operand.hbm [shape: f32[8,32,32], index: 5, kind: input, shape index: {}]   ;;  %s2909_s6 = inlined_call_operand.hbm [shape: f32[32,32], index: 6, kind: input, shape index: {}]   ;;  %s2910_s7 = inlined_call_operand.vmem [shape: f32[1,32], index: 7, kind: input, shape index: {}]   ;;  %s2911_s8 = inlined_call_operand.hbm [shape: f32[2,8,32], index: 8, kind: output, shape index: {0}]   ;;  %s2912_s9 = inlined_call_operand.hbm [shape: f32[2,4,8,8], index: 9, kind: output, shape index: {1}]  }
   0x1   :  { %2917 = sst [smem:[#allocation19_spill]] %s2904_s1 }
   0x2   :  { %2918 = sst [smem:[#allocation20_spill]] %s2905_s2 }
   0x3   :  { %2919 = sst [smem:[#allocation21_spill]] %s2908_s5 }
   0x4   :  { %2920 = sst [smem:[#allocation22_spill]] %s2909_s6 }
   0x5   :  { %15 = vsyncpa [#allocation3], 0 }
   0x6   :  { %17 = vsyncpa [#allocation3 + $0x1], 0 }
   0x7   :  { %18 = vsyncpa [#allocation6], 0 }
   0x8   :  { %19 = vsyncpa [#allocation9], 0 }
   0x9   :  { %20 = vsyncpa [#allocation4], 0 }
   0xa   :  { %22 = vsyncpa [#allocation4 + $0x1], 0 }
   0xb   :  { %23 = vsyncpa [#allocation13], 0 }
   0xc   :  { %25 = vsyncpa [#allocation13 + $0x1], 0  ;;  %s2449_s30 = smov 0   ;;  %s2451_s10 = smov 0  }
   0xd   :  { %s2453_s11 = smov 0   ;;  %s2455_s12 = smov 0  }
   0xe LB: > { %s2381_s13 = smov [#allocation5]   ;;  %s2470_s15 = sadd.s32 4294967295, %s2379_s12   ;;  %s2379_s12 = sphi %s2455_s12, %s2944_s12   ;;  %s2375_s11 = sphi %s2453_s11, %s2943_s11   ;;  %s2371_s10 = sphi %s2451_s10, %s2942_s10   ;;  %s2367_s30 = sphi %s2449_s30, %s2941_s30  }
   0xf   : > { %s273_s14 = sshll.u32 %s2381_s13, 4  ;;  %p1877_p0 = scmp.ge.s32.totalorder %s2379_s12, 1  ;;  %s274_s14 = int_to_ptr.vmem [resolvable:$true] %s273_s14 }
  0x10   : > { %p2913_p1 = scmp.eq.s32.totalorder %s2470_s15, 0  ;;  %p261_p2 = scmp.lt.s32.totalorder %s2379_s12, 3 }
  0x11   : > { %s2382_s17 = smov [#allocation8]   ;;  %s2383_s20 = smov [#allocation7]  }
  0x12   : > { %p2475_p3 = pnand %p1877_p0, %p261_p2  ;;  %s305_s18 = sshll.u32 %s2382_s17, 4  ;;  %s2488_s18 = int_to_ptr.vmem [resolvable:$true] %s305_s18 }
  0x13   : > { %s286_s21 = sshll.u32 %s2383_s20, 4  ;;  %s2156_s22 = scalar_lea.vmem %s274_s14, 512  ;;  %s2490_s21 = int_to_ptr.vmem [resolvable:$true] %s286_s21 }
  0x14   : > { %s2921_s16 = scalar_select %p2475_p3, 1, 0 }
  0x15   : > { %p2048_p5 = pneg %p2475_p3  ;;  %p2157_p8 = scmp.ne.s32.totalorder %s274_s14, %s2156_s22 }
  0x16   : > { %p2164_p11 = scmp.lt.s32.totalorder %s274_s14, %s274_s14  ;;  %p2165_p12 = scmp.lt.s32.totalorder %s2156_s22, %s2156_s22 }
  0x17   : > { %p2484_p6 = pnand %p2048_p5, %p2913_p1 }
  0x18   : > { %p2166_p13 = por %p2165_p12, %p2164_p11 }
  0x19   : > { %p2147_p7 = pneg %p2484_p6 }
  0x1b   : > { %p2159_p9 = pnand %p2157_p8, %p2147_p7 }
  0x1d   : > { %p2160_p10 = pneg %p2159_p9 }
  0x1f   : > { %p2167_p0 = pnand %p2166_p13, %p2160_p10 }
  0x21   : > { %2170 = shalt.err (!%p2167_p0)
}
  0x22   : > { %s2384_s23 = smov 128   ;;  %s2385_s24 = smov 8  }
  0x23   : > { %s2923_s1 = sld [smem:[#allocation19_spill]]  ;;  %s2182_s27 = scalar_lea.vmem %s2488_s18, 4096 }
  0x24   : > { %p2183_p2 = scmp.ne.s32.totalorder %s2488_s18, %s2182_s27  ;;  %p2190_p9 = scmp.lt.s32.totalorder %s2488_s18, %s2488_s18 }
  0x25   : > { %p2191_p10 = scmp.lt.s32.totalorder %s2182_s27, %s2182_s27 }
  0x26   : > { %p2185_p5 = pnand %p2183_p2, %p2147_p7 }
  0x27   : > { %p2192_p11 = por %p2191_p10, %p2190_p9 }
  0x28   : > { %p2186_p8 = pneg %p2185_p5 }
  0x29   : > { %2051 = dma.hbm_to_vmem [thread:$0]  (!%p2484_p6), %s2923_s1, 512, %s274_s14, [#allocation6], %s2384_s23, %s2384_s23, %s2385_s24  }
  0x2a   : > { %p2193_p12 = pnand %p2192_p11, %p2186_p8 }
  0x2c   : > { %2196 = shalt.err (!%p2193_p12)
}
  0x2d   : > { %s2924_s5 = sld [smem:[#allocation21_spill]]  ;;  %s2208_s13 = scalar_lea.vmem %s2490_s21, 512 }
  0x2e   : > { %p2209_p13 = scmp.ne.s32.totalorder %s2490_s21, %s2208_s13  ;;  %p2216_p5 = scmp.lt.s32.totalorder %s2490_s21, %s2490_s21 }
  0x2f   : > { %p2217_p8 = scmp.lt.s32.totalorder %s2208_s13, %s2208_s13 }
  0x30   : > { %p2211_p0 = pnand %p2209_p13, %p2147_p7 }
  0x31   : > { %p2218_p9 = por %p2217_p8, %p2216_p5 }
  0x32   : > { %p2212_p2 = pneg %p2211_p0 }
  0x33   : > { %2057 = dma.hbm_to_vmem [thread:$0]  (!%p2484_p6), %s2924_s5, 4096, %s2488_s18, [#allocation9], %s2384_s23, %s2384_s23, %s2385_s24  }
  0x34   : > { %p2219_p10 = pnand %p2218_p9, %p2212_p2 }
  0x36   : > { %2222 = shalt.err (!%p2219_p10)
}
  0x37   : > { %s2925_s2 = sld [smem:[#allocation20_spill]]  ;;  %s2386_s18 = smov [#allocation10]  }
  0x38   : > { %s318_s20 = sshll.u32 %s2386_s18, 4  ;;  %s319_s20 = int_to_ptr.vmem [resolvable:$true] %s318_s20 }
  0x39   : > { %s2234_s22 = scalar_lea.vmem %s319_s20, 512  ;;  %p2242_p0 = scmp.lt.s32.totalorder %s319_s20, %s319_s20 }
  0x3a   : > { %p2235_p11 = scmp.ne.s32.totalorder %s319_s20, %s2234_s22  ;;  %p2243_p2 = scmp.lt.s32.totalorder %s2234_s22, %s2234_s22 }
  0x3c   : > { %p2237_p12 = pnand %p2235_p11, %p2147_p7  ;;  %p2244_p5 = por %p2243_p2, %p2242_p0 }
  0x3d   : > { %2054 = dma.hbm_to_vmem [thread:$0]  (!%p2484_p6), %s2925_s2, 512, %s2490_s21, [#allocation6], %s2384_s23, %s2384_s23, %s2385_s24  }
  0x3e   : > { %p2238_p13 = pneg %p2237_p12 }
  0x40   : > { %p2245_p8 = pnand %p2244_p5, %p2238_p13 }
  0x42   : > { %2248 = shalt.err (!%p2245_p8)
}
  0x43   : > { %s2926_s6 = sld [smem:[#allocation22_spill]]  ;;  %s1876_s19 = sadd.s32 4294967294, %s2379_s12  }
  0x44   : > { %s2550_s26 = sadd.s32 1, %s2379_s12   ;;  %s38_s28 = sadd.s32 1, %s2375_s11 }
  0x45   : > { %s35_s27 = ssub.s32 %s2379_s12, %s2550_s26  ;;  %p45_p9 = scmp.ne.s32.totalorder %s2375_s11, %s2371_s10 }
  0x46   : > { %p36_p7 = scmp.eq.s32.totalorder %s35_s27, 0  ;;  %p46_p10 = scmp.eq.s32.totalorder %s2379_s12, 0 }
  0x47   : > { %p51_p11 = scmp.ne.s32.totalorder %s2371_s10, %s2367_s30  ;;  %p222_p13 = scmp.eq.s32.totalorder %s2470_s15, 1 }
  0x48   : > { %s2561_s29 = scalar_select %p36_p7, %s2375_s11, %s38_s28  }
  0x49   : > { %2060 = dma.hbm_to_vmem [thread:$0]  (!%p2484_p6), %s2926_s6, 512, %s319_s20, [#allocation9], %s2384_s23, %s2384_s23, %s2385_s24  }
  0x4a   : > { %p2563_p12 = por %p46_p10, %p45_p9  ;;  %p2569_p6 = por %p2913_p1, %p51_p11 }
  0x4b   : > { %p228_p0 = scmp.eq.s32.totalorder %s1876_s19, 1  ;;  %p2076_p2 = scmp.lt.s32.totalorder %s2379_s12, 2 }
  0x4c   : > { %s2928_s23 = scalar_select %p2569_p6, 1, 0 }
  0x4d   : > { %s335_s24 = sand.u32 1, %s2375_s11   ;;  %p2576_p5 = por %p222_p13, %p45_p9 }
  0x4e   : > { %p2580_p8 = por %p228_p0, %p51_p11  ;;  %s1883_s18 = sshll.u32 %s335_s24, 3 }
  0x4f   : > { %s2929_s14 = scalar_select %p2576_p5, 1, 0 }
  0x50   : > { %s2930_s17 = scalar_select %p2580_p8, 1, 0 }
  0x51   : > { %s1884_s20 = sshll.u32 %s2379_s12, 7  ;;  %s339_s19 = scalar_lea.vmem [#allocation2], %s1883_s18 }
  0x52   : > { %s2588_s25 = scalar_lea.hbm %s2903_s0, %s1884_s20  ;;  %s346_s27 = sshll.u32 %s339_s19, 4  ;;  %s347_s27 = int_to_ptr.vmem [resolvable:$true] %s346_s27 }
  0x53   : > { %p2592_p7 = pnand %p2076_p2, %p2563_p12  ;;  %s336_s1 = scalar_lea.sflag [#allocation3], %s335_s24 }
  0x54   : > { %s2249_s2 = scalar_lea.hbm %s2588_s25, 128  ;;  %s2254_s21 = scalar_lea.hbm %s2903_s0, 256 }
  0x55   : > { %p2250_p9 = scmp.ne.s32.totalorder %s2588_s25, %s2249_s2  ;;  %p2251_p10 = pneg %p2592_p7 }
  0x56   : > { %p2255_p0 = scmp.lt.s32.totalorder %s2588_s25, %s2903_s0  ;;  %p2256_p12 = scmp.lt.s32.totalorder %s2254_s21, %s2249_s2 }
  0x57   : > { %p2252_p11 = pnand %p2251_p10, %p2250_p9 }
  0x58   : > { %p2257_p2 = por %p2256_p12, %p2255_p0 }
  0x59   : > { %p2253_p13 = pneg %p2252_p11 }
  0x5b   : > { %p2258_p4 = pnand %p2257_p2, %p2253_p13 }
  0x5d   : > { %2261 = shalt.err (!%p2258_p4)
}
  0x5e   : > { %s2262_s13 = scalar_lea.vmem %s347_s27, 128  ;;  %s2387_s24 = smov [#allocation2]  }
  0x5f   : > { %p2263_p1 = scmp.ne.s32.totalorder %s347_s27, %s2262_s13  ;;  %s2267_s5 = sshll.u32 %s2387_s24, 4  ;;  %s2268_s5 = int_to_ptr.vmem [resolvable:$false] %s2267_s5 }
  0x60   : > { %s2269_s6 = scalar_lea.vmem %s2268_s5, 256  ;;  %p2270_p9 = scmp.lt.s32.totalorder %s347_s27, %s2268_s5 }
  0x61   : > { %p2265_p8 = pnand %p2263_p1, %p2251_p10  ;;  %p2271_p11 = scmp.lt.s32.totalorder %s2269_s6, %s2262_s13 }
  0x63   : > { %p2266_p5 = pneg %p2265_p8  ;;  %p2272_p6 = por %p2271_p11, %p2270_p9 }
  0x65   : > { %p2273_p3 = pnand %p2272_p6, %p2266_p5 }
  0x67   : > { %2276 = shalt.err (!%p2273_p3)
}
  0x68   : > { %2064 = dma.hbm_to_vmem [thread:$0]  (!%p2592_p7), %s2588_s25, 128, %s347_s27, %s336_s1  }
  0x69   : > { %p2932_p13 = scmp.ne.s32.totalorder %s2921_s16, 0 }
  0x6a   : > { %s2613_s2 = sand.u32 (!%p2932_p13), 1, %s2371_s10   ;;  %p2933_p1 = scmp.ne.s32.totalorder (!%p2932_p13), %s2928_s23, 0 }
  0x6b   : > { %355 = sbr.rel (%p2932_p13) target bundleno = 1522 (0x5f2), region = 52  ;;  %s1886_s20 = sshll.u32 (!%p2932_p13), %s2613_s2, 3 }
  0x6c   : > { %s358_s5 = scalar_lea.sflag (!%p2932_p13), [#allocation3], %s2613_s2  ;;  %s2619_s6 = scalar_lea.vmem (!%p2932_p13), [#allocation2], %s1886_s20 }
  0x70   : > { %2346 = dma.done.wait (%p2933_p1), %s358_s5, 128  }
  0x71   : > { %2348 = vsyncadd (%p2933_p1), %s358_s5, 4294967168  ;;  %p2934_p3 = scmp.eq.s32.totalorder %s2470_s15, 0 }
  0x73   : > { %2350 = dma.done.wait (%p2934_p3), [#allocation6], 1024   ;;  %p2935_p4 = pmov %p2934_p3 }
  0x74   : > { %p2936_p6 = pmov %p2934_p3 }
  0x75   : > { %2352 = vsyncadd (%p2935_p4), [#allocation6], 4294966272 }
  0x76   : > { %2354 = dma.done.wait (%p2936_p6), [#allocation9], 4608   ;;  %p2937_p5 = pmov %p2934_p3 }
  0x77   : > { %v2388_v0 = vmov 0.0   ;;  %vm2389_vm0 = vmmov 0   ;;  %v421_v1 = vld [vmem:[#allocation5 + $0x18] sm:$0xff]  ;;  %v420_v3 = vld [vmem:[#allocation5 + $0x10] sm:$0xff]  ;;  %v419_v5 = vld [vmem:[#allocation5 + $0x8] sm:$0xff]  ;;  %vm429_vm1 = vcmask 261120   ;;  %v617_v14 = vlaneseq }
  0x78   : > { %2356 = vsyncadd (%p2937_p5), [#allocation9], 4294962688  ;;  %1953 = vmatprep.subr.mxu0 %v2388_v0  ;;  %1964 = vmatprep.subr.mxu1 %v2388_v0  ;;  %v506_v2 = vld [vmem:[#allocation7 + $0x18] sm:$0xff]  ;;  %v505_v4 = vld [vmem:[#allocation7 + $0x10] sm:$0xff]  ;;  %vm913_vm2 = vcmask 64512   ;;  %s2390_s27 = smov 112  }
  0x79   : > { %1961 = vmatprep.mubr.msk.f32.mxu0 %vm2389_vm0, %v2388_v0  ;;  %1972 = vmatprep.mubr.msk.f32.mxu1 %vm2389_vm0, %v2388_v0  ;;  %v504_v6 = vld [vmem:[#allocation7 + $0x8] sm:$0xff]  ;;  %v418_v7 = vld [vmem:[#allocation5] sm:$0xff]  ;;  %v2644_v9 = vld [vmem:[%s2619_s6] sm:$0xff]  ;;  %s2391_s28 = smov 120   ;;  %v618_v20 = vshrl.u32 %v617_v14, 7  ;;  %s2392_s22 = smov 104  }
  0x7a   : > { %1954 = vmatpush3.msra.mxu0 %v421_v1  ;;  %1965 = vmatpush3.msra.mxu1 %v506_v2  ;;  %v503_v8 = vld [vmem:[#allocation7] sm:$0xff]  ;;  %v1893_v10 = vld [vmem:[%s2906_s3] ss:$0 sm:$0xff]  ;;  %v586_v43 = vld [vmem:[#allocation8 + $0x8] sm:$0xff]  ;;  %vm1010_vm3 = vcmask 1041409   ;;  %vm1012_vm4 = vcmask 1042434  }
  0x7b   : > { %1955 = vmatprep.subr.mxu0 %v2388_v0  ;;  %1966 = vmatprep.subr.mxu1 %v2388_v0  ;;  %v1895_v11 = vld [vmem:[%s2907_s4] ss:$0 sm:$0xff]  ;;  %v619_v21 = vsub.s32 0, %v618_v20  ;;  %v657_v23 = vsub.s32 2, %v618_v20  ;;  %v638_v24 = vsub.s32 1, %v618_v20  ;;  %v676_v27 = vsub.s32 3, %v618_v20 }
  0x7c   : > { %1956 = vmatpush3.msra.mxu0 %v420_v3  ;;  %1967 = vmatpush3.msra.mxu1 %v505_v4  ;;  %v695_v29 = vsub.s32 4, %v618_v20  ;;  %v714_v31 = vsub.s32 5, %v618_v20  ;;  %v733_v33 = vsub.s32 6, %v618_v20  ;;  %v752_v35 = vsub.s32 7, %v618_v20  ;;  %v585_v44 = vld [vmem:[#allocation8] sm:$0xff]  ;;  %v587_v54 = vld [vmem:[#allocation8 + $0x10] sm:$0xff] }
  0x7d   : > { %1957 = vmatprep.subr.mxu0 %v2388_v0  ;;  %1968 = vmatprep.subr.mxu1 %v2388_v0  ;;  %v620_v22 = vrot.slane %v2644_v9, %v619_v21  ;;  %v658_v25 = vrot.slane %v2644_v9, %v657_v23  ;;  %v639_v26 = vrot.slane %v2644_v9, %v638_v24  ;;  %v593_v53 = vld [vmem:[#allocation8 + $0x40] sm:$0xff]  ;;  %v594_v60 = vld [vmem:[#allocation8 + $0x48] sm:$0xff]  ;;  %v592_v24 = vld [vmem:[#allocation8 + $0x38] sm:$0xff]  ;;  %vm1014_vm5 = vcmask 1043459   ;;  %s1892_s21 = sshll.u32 %s2613_s2, 5  ;;  %s2393_s19 = smov 8  }
  0x7e   : > { %1958 = vmatpush3.msra.mxu0 %v419_v5  ;;  %1969 = vmatpush3.msra.mxu1 %v504_v6  ;;  %v677_v28 = vrot.slane %v2644_v9, %v676_v27  ;;  %v696_v30 = vrot.slane %v2644_v9, %v695_v29  ;;  %v2681_v32 = vrot.slane %v2644_v9, %v714_v31  ;;  %v589_v61 = vld [vmem:[#allocation8 + $0x20] sm:$0xff]  ;;  %v590_v62 = vld [vmem:[#allocation8 + $0x28] sm:$0xff]  ;;  %vm1016_vm6 = vcmask 1044484   ;;  %s2794_s18 = scalar_lea.vmem [#allocation12], %s1892_s21  ;;  %s2394_s13 = smov 16  }
  0x7f   : > { %1959 = vmatprep.subr.mxu0 %v2388_v0  ;;  %1970 = vmatprep.subr.mxu1 %v2388_v0  ;;  %v2685_v34 = vrot.slane %v2644_v9, %v733_v33  ;;  %v2690_v36 = vrot.slane %v2644_v9, %v752_v35  ;;  %v598_v31 = vld [vmem:[#allocation8 + $0x68] sm:$0xff]  ;;  %vm1018_vm7 = vcmask 1045509   ;;  %vm1020_vm8 = vcmask 1046534   ;;  %s2395_s24 = smov 24   ;;  %s1921_s5 = sshll.u32 %s2470_s15, 9 }
  0x80   : > { %1960 = vmatpush3.msra.mxu0 %v418_v7  ;;  %1971 = vmatpush3.msra.mxu1 %v503_v8  ;;  %v595_v8 = vld [vmem:[#allocation8 + $0x50] sm:$0xff]  ;;  %vm1022_vm9 = vcmask 1047559   ;;  %vm1612_vm10 = vcmask 130048   ;;  %vm1614_vm11 = vcmask 195584   ;;  %s1733_s6 = sshll.u32 %s2794_s18, 4  ;;  %s2828_s23 = scalar_lea.hbm %s2912_s9, %s1921_s5  ;;  %s2830_s6 = int_to_ptr.vmem [resolvable:$true] %s1733_s6 }
  0x81   : > { %1962 = vmatmul.mubr.msk.f32.vlgmr.msra.gmra.mxu0 %vm429_vm1, %v2644_v9  ;;  %1973 = vmatmul.mubr.msk.f32.vlgmr.msra.gmra.mxu1 %vm429_vm1, %v2644_v9  ;;  %s1707_s25 = scalar_lea.sflag [#allocation13], %s2613_s2  ;;  %p2938_p7 = scmp.ne.s32.totalorder %s2929_s14, 0 }
  0x82   : > { %1975 = vmatprep.subr.mxu1 %v2388_v0  ;;  %1977 = vmatprep.mubr.msk.f32.mxu1 %vm2389_vm0, %v2388_v0 }
  0x83   : > { %1985 = vmatprep.subr.mxu0 %v2388_v0  ;;  %1987 = vmatprep.mubr.msk.f32.mxu0 %vm2389_vm0, %v2388_v0 }
 0x141   : > { %v499_v12 = vpop.f32.mrf.mxu0  ;;  %v580_v13 = vpop.f32.mrf.mxu1 }
 0x142   : > { %v500_v15 = vadd.f32 %v1893_v10, %v499_v12  ;;  %v581_v16 = vadd.f32 %v1895_v11, %v580_v13  ;;  %v591_v10 = vld [vmem:[#allocation8 + $0x30] sm:$0xff] }
 0x143   : > { %v1963_v17 = vpop.f32.mrf.mxu0  ;;  %v1974_v18 = vpop.f32.mrf.mxu1 }
 0x144   : > { %v584_v19 = vmul.f32 0.35355338, %v581_v16  ;;  %1267 = vrot.lane.b32.xlu1 %v500_v15, %s2390_s27  ;;  %1100 = vrot.lane.b32.xlu0 %v500_v15, %s2391_s28 }
 0x145   : > { %1976 = vmatpush3.xpose.msk.msra.mxu1 %vm913_vm2, %v500_v15 }
 0x146   : > { %1980 = vmatprep.subr.mxu1 %v2388_v0 }
 0x148   : > { %1978 = vmatmul.mubr.msk.f32.vlgmr.msra.gmra.mxu1 %vm913_vm2, %v584_v19  ;;  %1265 = vrot.lane.b32.xlu1 %v584_v19, %s2390_s27 }
 0x149   : > { %1098 = vrot.lane.b32.xlu0 %v584_v19, %s2391_s28  ;;  %1982 = vmatprep.mubr.msk.f32.mxu1 %vm2389_vm0, %v2388_v0 }
 0x14c   : > { %1432 = vrot.lane.b32.xlu1 %v584_v19, %s2392_s22 }
 0x14d   : > { %1434 = vrot.lane.b32.xlu0 %v500_v15, %s2392_s22 }
 0x150   : > { %622 = vbcast.lane.b32.xlu1 %v620_v22, 256 }
 0x151   : > { %626 = vbcast.lane.b32.xlu0 %v620_v22, 264 }
 0x154   : > { %641 = vbcast.lane.b32.xlu1 %v639_v26, 256 }
 0x155   : > { %660 = vbcast.lane.b32.xlu0 %v658_v25, 256 }
 0x158   : > { %645 = vbcast.lane.b32.xlu1 %v639_v26, 264 }
 0x159   : > { %630 = vbcast.lane.b32.xlu0 %v620_v22, 272 }
 0x15c   : > { %664 = vbcast.lane.b32.xlu1 %v658_v25, 264 }
 0x15d   : > { %679 = vbcast.lane.b32.xlu0 %v677_v28, 256 }
 0x160   : > { %649 = vbcast.lane.b32.xlu1 %v639_v26, 272 }
 0x161   : > { %668 = vbcast.lane.b32.xlu0 %v658_v25, 272 }
 0x164   : > { %683 = vbcast.lane.b32.xlu1 %v677_v28, 264 }
 0x165   : > { %702 = vbcast.lane.b32.xlu0 %v696_v30, 264 }
 0x168   : > { %698 = vbcast.lane.b32.xlu1 %v696_v30, 256 }
 0x169   : > { %653 = vbcast.lane.b32.xlu0 %v639_v26, 280 }
 0x16c   : > { %634 = vbcast.lane.b32.xlu1 %v620_v22, 280 }
 0x16d   : > { %717 = vbcast.lane.b32.xlu0 %v2681_v32, 256 }
 0x170   : > { %687 = vbcast.lane.b32.xlu1 %v677_v28, 272 }
 0x171   : > { %672 = vbcast.lane.b32.xlu0 %v658_v25, 280 }
 0x174   : > { %721 = vbcast.lane.b32.xlu1 %v2681_v32, 264 }
 0x175   : > { %736 = vbcast.lane.b32.xlu0 %v2685_v34, 256 }
 0x178   : > { %706 = vbcast.lane.b32.xlu1 %v696_v30, 272 }
 0x179   : > { %691 = vbcast.lane.b32.xlu0 %v677_v28, 280  ;;  %v597_v28 = vld [vmem:[#allocation8 + $0x60] sm:$0xff] }
 0x17c   : > { %740 = vbcast.lane.b32.xlu1 %v2685_v34, 264 }
 0x17d   : > { %755 = vbcast.lane.b32.xlu0 %v2690_v36, 256 }
 0x180   : > { %725 = vbcast.lane.b32.xlu1 %v2681_v32, 272 }
 0x181   : > { %710 = vbcast.lane.b32.xlu0 %v696_v30, 280  ;;  %v588_v30 = vld [vmem:[#allocation8 + $0x18] sm:$0xff] }
 0x184   : > { %759 = vbcast.lane.b32.xlu1 %v2690_v36, 264 }
 0x188   : > { %744 = vbcast.lane.b32.xlu1 %v2685_v34, 272 }
 0x1b6   : > { %v1268_v37 = vpop.permute.xlu1 %1267  ;;  %v1101_v38 = vpop.permute.xlu0 %1100 }
 0x1b7   : > { %1986 = vmatpush3.xpose.msk.msra.mxu0 %vm913_vm2, %v1101_v38 }
 0x1b8   : > { %1995 = vmatprep.subr.mxu0 %v2388_v0 }
 0x1ba   : > { %v1266_v39 = vpop.permute.xlu1 %1265 }
 0x1bb   : > { %v1099_v40 = vpop.permute.xlu0 %1098 }
 0x1bc   : > { %1988 = vmatmul.mubr.msk.f32.vlgmr.msra.gmra.mxu0 %vm913_vm2, %v1099_v40 }
 0x1bd   : > { %1996 = vmatpush3.xpose.msk.msra.mxu0 %vm913_vm2, %v1268_v37  ;;  %1997 = vmatprep.mubr.msk.f32.mxu0 %vm2389_vm0, %v2388_v0 }
 0x1be   : > { %v1433_v41 = vpop.permute.xlu1 %1432  ;;  %2005 = vmatprep.subr.mxu0 %v2388_v0 }
 0x1bf   : > { %v1435_v42 = vpop.permute.xlu0 %1434 }
 0x1c0   : > { %1998 = vmatmul.mubr.msk.f32.vlgmr.msra.gmra.mxu0 %vm913_vm2, %v1266_v39 }
 0x1c1   : > { %2006 = vmatpush3.xpose.msk.msra.mxu0 %vm913_vm2, %v1435_v42  ;;  %2007 = vmatprep.mubr.msk.f32.mxu0 %vm2389_vm0, %v2388_v0 }
 0x1c2   : > { %v623_v45 = vpop.permute.xlu1 %622  ;;  %2015 = vmatprep.subr.mxu0 %v2388_v0 }
 0x1c3   : > { %v627_v46 = vpop.permute.xlu0 %626  ;;  %v769_v48 = vmul.f32 %v623_v45, %v585_v44  ;;  %v599_v45 = vld [vmem:[#allocation8 + $0x70] sm:$0xff] }
 0x1c4   : > { %2008 = vmatmul.mubr.msk.f32.vlgmr.msra.gmra.mxu0 %vm913_vm2, %v1433_v41  ;;  %v770_v47 = vmul.f32 %v627_v46, %v586_v43  ;;  %v596_v43 = vld [vmem:[#allocation8 + $0x58] sm:$0xff] }
 0x1c5   : > { %2023 = vmatprep.mubr.msk.f32.mxu0 %vm2389_vm0, %v2388_v0  ;;  %v801_v52 = vsel %vm429_vm1, %v769_v48, 0.0 }
 0x1c6   : > { %v642_v49 = vpop.permute.xlu1 %641  ;;  %v802_v51 = vsel %vm429_vm1, %v770_v47, 0.0 }
 0x1c7   : > { %v661_v50 = vpop.permute.xlu0 %660  ;;  %v803_v56 = vadd.f32 %v802_v51, %v801_v52  ;;  %v773_v6 = vmul.f32 %v642_v49, %v589_v61  ;;  %v602_v49 = vld [vmem:[#allocation8 + $0x88] sm:$0xff] }
 0x1c8   : > { %v777_v58 = vmul.f32 %v661_v50, %v593_v53  ;;  %v601_v53 = vld [vmem:[#allocation8 + $0x80] sm:$0xff] }
 0x1c9   : > { %v814_v14 = vsel %vm429_vm1, %v773_v6, 0.0 }
 0x1ca   : > { %v646_v55 = vpop.permute.xlu1 %645  ;;  %v827_v5 = vsel %vm429_vm1, %v777_v58, 0.0 }
 0x1cb   : > { %v631_v57 = vpop.permute.xlu0 %630  ;;  %v774_v7 = vmul.f32 %v646_v55, %v590_v62 }
 0x1cc   : > { %v771_v59 = vmul.f32 %v631_v57, %v587_v54 }
 0x1cd   : > { %v815_v15 = vsel %vm429_vm1, %v774_v7, 0.0  ;;  %v600_v7 = vld [vmem:[#allocation8 + $0x78] sm:$0xff] }
 0x1ce   : > { %v804_v63 = vsel %vm429_vm1, %v771_v59, 0.0  ;;  %v665_v1 = vpop.permute.xlu1 %664  ;;  %v816_v20 = vadd.f32 %v815_v15, %v814_v14 }
 0x1cf   : > { %v805_v2 = vadd.f32 %v804_v63, %v803_v56  ;;  %v680_v3 = vpop.permute.xlu0 %679  ;;  %v778_v4 = vmul.f32 %v665_v1, %v594_v60 }
 0x1d0   : > { %v781_v37 = vmul.f32 %v680_v3, %v597_v28 }
 0x1d1   : > { %v828_v9 = vsel %vm429_vm1, %v778_v4, 0.0 }
 0x1d2   : > { %v650_v11 = vpop.permute.xlu1 %649  ;;  %v829_v13 = vadd.f32 %v828_v9, %v827_v5  ;;  %v840_v48 = vsel %vm429_vm1, %v781_v37, 0.0 }
 0x1d3   : > { %v669_v12 = vpop.permute.xlu0 %668  ;;  %v775_v17 = vmul.f32 %v650_v11, %v591_v10 }
 0x1d4   : > { %v779_v16 = vmul.f32 %v669_v12, %v595_v8  ;;  %v603_v8 = vld [vmem:[#allocation8 + $0x90] sm:$0xff] }
 0x1d5   : > { %v817_v23 = vsel %vm429_vm1, %v775_v17, 0.0 }
 0x1d6   : > { %v830_v18 = vsel %vm429_vm1, %v779_v16, 0.0  ;;  %v684_v19 = vpop.permute.xlu1 %683  ;;  %v818_v26 = vadd.f32 %v817_v23, %v816_v20 }
 0x1d7   : > { %v703_v21 = vpop.permute.xlu0 %702  ;;  %v831_v22 = vadd.f32 %v830_v18, %v829_v13  ;;  %v782_v41 = vmul.f32 %v684_v19, %v598_v31 }
 0x1d8   : > { %v786_v58 = vmul.f32 %v703_v21, %v602_v49 }
 0x1d9   : > { %v841_v52 = vsel %vm429_vm1, %v782_v41, 0.0 }
 0x1da   : > { %v699_v25 = vpop.permute.xlu1 %698  ;;  %v842_v63 = vadd.f32 %v841_v52, %v840_v48  ;;  %v854_v12 = vsel %vm429_vm1, %v786_v58, 0.0 }
 0x1db   : > { %v654_v27 = vpop.permute.xlu0 %653  ;;  %v785_v1 = vmul.f32 %v699_v25, %v601_v53 }
 0x1dc   : > { %v776_v29 = vmul.f32 %v654_v27, %v592_v24 }
 0x1dd   : > { %v853_v13 = vsel %vm429_vm1, %v785_v1, 0.0 }
 0x1de   : > { %v819_v33 = vsel %vm429_vm1, %v776_v29, 0.0  ;;  %v635_v35 = vpop.permute.xlu1 %634  ;;  %v855_v23 = vadd.f32 %v854_v12, %v853_v13  ;;  %v604_v29 = vld [vmem:[#allocation8 + $0x98] sm:$0xff]  ;;  %v607_v12 = vld [vmem:[#allocation8 + $0xb0] sm:$0xff] }
 0x1df   : > { %v820_v38 = vadd.f32 %v819_v33, %v818_v26  ;;  %v2722_v39 = vpop.permute.xlu0 %717  ;;  %v772_v40 = vmul.f32 %v635_v35, %v588_v30 }
 0x1e1   : > { %v821_v42 = vrot.slane %v820_v38, 4  ;;  %v806_v44 = vsel %vm429_vm1, %v772_v40, 0.0 }
 0x1e2   : > { %v807_v46 = vadd.f32 %v806_v44, %v805_v2  ;;  %v688_v47 = vpop.permute.xlu1 %687 }
 0x1e3   : > { %v822_v50 = vadd.f32 %v821_v42, %v820_v38  ;;  %v673_v51 = vpop.permute.xlu0 %672  ;;  %v783_v56 = vmul.f32 %v688_v47, %v599_v45 }
 0x1e4   : > { %v780_v54 = vmul.f32 %v673_v51, %v596_v43  ;;  %v808_v55 = vrot.slane %v807_v46, 4 }
 0x1e5   : > { %v823_v57 = vrot.slane %v822_v50, 2  ;;  %v843_v5 = vsel %vm429_vm1, %v783_v56, 0.0 }
 0x1e6   : > { %v832_v59 = vsel %vm429_vm1, %v780_v54, 0.0  ;;  %v809_v60 = vadd.f32 %v808_v55, %v807_v46  ;;  %v2728_v61 = vpop.permute.xlu1 %721  ;;  %v844_v14 = vadd.f32 %v843_v5, %v842_v63 }
 0x1e7   : > { %v824_v62 = vadd.f32 %v823_v57, %v822_v50  ;;  %v833_v2 = vadd.f32 %v832_v59, %v831_v22  ;;  %v2730_v3 = vpop.permute.xlu0 %736 }
 0x1e8   : > { %v810_v4 = vrot.slane %v809_v60, 2 }
 0x1e9   : > { %v825_v6 = vrot.slane %v824_v62, 1  ;;  %v834_v9 = vrot.slane %v833_v2, 4 }
 0x1ea   : > { %v811_v10 = vadd.f32 %v810_v4, %v809_v60  ;;  %v707_v11 = vpop.permute.xlu1 %706 }
 0x1eb   : > { %v692_v15 = vpop.permute.xlu0 %691  ;;  %v826_v16 = vadd.f32 %v825_v6, %v824_v62  ;;  %v787_v19 = vmul.f32 %v707_v11, %v603_v8  ;;  %v835_v20 = vadd.f32 %v834_v9, %v833_v2  ;;  %v605_v8 = vld [vmem:[#allocation8 + $0xa0] sm:$0xff]  ;;  %v606_v9 = vld [vmem:[#allocation8 + $0xa8] sm:$0xff] }
 0x1ec   : > { %v812_v17 = vrot.slane %v811_v10, 1  ;;  %v784_v18 = vmul.f32 %v692_v15, %v600_v7  ;;  %v790_v11 = vmul.f32 %v2728_v61, %v606_v9  ;;  %v612_v9 = vld [vmem:[#allocation8 + $0xd8] sm:$0xff] }
 0x1ed   : > { %v856_v27 = vsel %vm429_vm1, %v787_v19, 0.0  ;;  %v836_v30 = vrot.slane %v835_v20, 2  ;;  %v608_v19 = vld [vmem:[#allocation8 + $0xb8] sm:$0xff] }
 0x1ee   : > { %v813_v21 = vadd.f32 %v812_v17, %v811_v10  ;;  %v845_v22 = vsel %vm429_vm1, %v784_v18, 0.0  ;;  %v857_v33 = vadd.f32 %v856_v27, %v855_v23  ;;  %v741_v7 = vpop.permute.xlu1 %740  ;;  %v789_v10 = vmul.f32 %v2722_v39, %v605_v8 }
 0x1ef   : > { %v846_v24 = vadd.f32 %v845_v22, %v844_v14  ;;  %v2736_v25 = vpop.permute.xlu0 %755  ;;  %v837_v40 = vadd.f32 %v836_v30, %v835_v20  ;;  %v867_v15 = vsel %vm429_vm1, %v790_v11, 0.0 }
 0x1f0   : > { %v1011_v26 = vsel %vm1010_vm3, %v826_v16, %v813_v21  ;;  %v866_v14 = vsel %vm429_vm1, %v789_v10, 0.0 }
 0x1f1   : > { %v847_v28 = vrot.slane %v846_v24, 4  ;;  %v838_v45 = vrot.slane %v837_v40, 1  ;;  %v868_v18 = vadd.f32 %v867_v15, %v866_v14 }
 0x1f2   : > { %v726_v13 = vpop.permute.xlu1 %725 }
 0x1f3   : > { %v848_v31 = vadd.f32 %v847_v28, %v846_v24  ;;  %v711_v35 = vpop.permute.xlu0 %710  ;;  %v839_v49 = vadd.f32 %v838_v45, %v837_v40  ;;  %v791_v16 = vmul.f32 %v726_v13, %v607_v12  ;;  %v613_v40 = vld [vmem:[#allocation8 + $0xe0] sm:$0xff] }
 0x1f4   : > { %v788_v37 = vmul.f32 %v711_v35, %v604_v29  ;;  %v797_v45 = vmul.f32 %v2736_v25, %v613_v40 }
 0x1f5   : > { %v849_v38 = vrot.slane %v848_v31, 2  ;;  %v1013_v53 = vsel %vm1012_vm4, %v839_v49, %v1011_v26  ;;  %v869_v20 = vsel %vm429_vm1, %v791_v16, 0.0 }
 0x1f6   : > { %v858_v41 = vsel %vm429_vm1, %v788_v37, 0.0  ;;  %v870_v22 = vadd.f32 %v869_v20, %v868_v18 }
 0x1f7   : > { %v850_v42 = vadd.f32 %v849_v38, %v848_v31  ;;  %v859_v43 = vadd.f32 %v858_v41, %v857_v33  ;;  %v760_v38 = vpop.permute.xlu1 %759  ;;  %v614_v41 = vld [vmem:[#allocation8 + $0xe8] sm:$0xff] }
 0x1f9   : > { %v860_v44 = vrot.slane %v859_v43, 4  ;;  %v851_v46 = vrot.slane %v850_v42, 1 }
 0x1fb   : > { %v861_v47 = vadd.f32 %v860_v44, %v859_v43  ;;  %v852_v50 = vadd.f32 %v851_v46, %v850_v42  ;;  %v609_v42 = vld [vmem:[#allocation8 + $0xc0] sm:$0xff]  ;;  %v610_v43 = vld [vmem:[#allocation8 + $0xc8] sm:$0xff]  ;;  %v798_v46 = vmul.f32 %v760_v38, %v614_v41 }
 0x1fc   : > { %v794_v49 = vmul.f32 %v741_v7, %v610_v43 }
 0x1fd   : > { %v862_v48 = vrot.slane %v861_v47, 2  ;;  %v1015_v55 = vsel %vm1014_vm5, %v852_v50, %v1013_v53  ;;  %v611_v50 = vld [vmem:[#allocation8 + $0xd0] sm:$0xff]  ;;  %v892_v53 = vsel %vm429_vm1, %v797_v45, 0.0 }
 0x1fe   : > { %v880_v25 = vsel %vm429_vm1, %v794_v49, 0.0 }
 0x1ff   : > { %v863_v51 = vadd.f32 %v862_v48, %v861_v47  ;;  %v793_v47 = vmul.f32 %v2730_v3, %v609_v42  ;;  %v615_v48 = vld [vmem:[#allocation8 + $0xf0] sm:$0xff] }
 0x201   : > { %v864_v52 = vrot.slane %v863_v51, 1 }
 0x203   : > { %v865_v54 = vadd.f32 %v864_v52, %v863_v51 }
 0x205   : > { %v1017_v56 = vsel %vm1016_vm6, %v865_v54, %v1015_v55  ;;  %v893_v54 = vsel %vm429_vm1, %v798_v46, 0.0 }
 0x208   : > { %v986_v57 = vpop.f32.mrf.mxu1 }
 0x209   : > { %v990_v58 = vsel %vm913_vm2, %v986_v57, -inf }
 0x20a   : > { %991 = vmax.xlane.f32.xlu0 %v990_v58  ;;  %v1979_v59 = vpop.f32.mrf.mxu1  ;;  %v616_v58 = vld [vmem:[#allocation8 + $0xf8] sm:$0xff] }
 0x220   : > { %729 = vbcast.lane.b32.xlu0 %v2681_v32, 280 }
 0x27c   : > { %v2742_v60 = vpop.f32.mrf.mxu0 }
 0x27d   : > { %v1176_v62 = vsel %vm913_vm2, %v2742_v60, -inf }
 0x27e   : > { %1177 = vmax.xlane.f32.xlu1 %v1176_v62  ;;  %v1989_v63 = vpop.f32.mrf.mxu0 }
 0x27f   : > { %v894_v63 = vadd.f32 %v893_v54, %v892_v53 }
 0x280   : > { %v2746_v1 = vpop.f32.mrf.mxu0 }
 0x281   : > { %v1343_v2 = vsel %vm913_vm2, %v2746_v1, -inf }
 0x282   : > { %1344 = vmax.xlane.f32.xlu0 %v1343_v2  ;;  %v1999_v4 = vpop.f32.mrf.mxu0 }
 0x284   : > { %v2750_v5 = vpop.f32.mrf.mxu0 }
 0x285   : > { %v1510_v6 = vsel %vm913_vm2, %v2750_v5, -inf }
 0x286   : > { %1511 = vmax.xlane.f32.xlu0 %v1510_v6  ;;  %v2009_v32 = vpop.f32.mrf.mxu0 }
 0x28f   : > { %763 = vbcast.lane.b32.xlu1 %v2690_v36, 272 }
 0x293   : > { %v992_v17 = vpop.xlane.xlu0 %991  ;;  %767 = vbcast.lane.b32.xlu1 %v2690_v36, 280 }
 0x294   : > { %v993_v28 = vsub.f32 %v986_v57, %v992_v17  ;;  %v879_v57 = vsel %vm429_vm1, %v793_v47, 0.0 }
 0x295   : > { %v881_v7 = vadd.f32 %v880_v25, %v879_v57  ;;  %v1618_v57 = vld [vmem:[#allocation10 + $0x10] sm:$0xff]  ;;  %v1616_v25 = vld [vmem:[#allocation10] sm:$0xff] }
 0x296   : > { %v994_v31 = vmul.f32 1.442695, %v993_v28 }
 0x297   : > { %v730_v21 = vpop.permute.xlu0 %729 }
 0x298   : > { %v792_v39 = vmul.f32 %v730_v21, %v608_v19  ;;  %2129 = vpow2.f32 %v994_v31 }
 0x29a   : > { %v871_v61 = vsel %vm429_vm1, %v792_v39, 0.0 }
 0x29b   : > { %v872_v23 = vadd.f32 %v871_v61, %v870_v22 }
 0x29c   : > { %748 = vbcast.lane.b32.xlu0 %v2685_v34, 280  ;;  %v745_v34 = vpop.permute.xlu1 %744 }
 0x29d   : > { %v873_v24 = vrot.slane %v872_v23, 4  ;;  %v795_v59 = vmul.f32 %v745_v34, %v611_v50 }
 0x29f   : > { %v874_v26 = vadd.f32 %v873_v24, %v872_v23 }
 0x2a1   : > { %v875_v27 = vrot.slane %v874_v26, 2 }
 0x2a3   : > { %v876_v29 = vadd.f32 %v875_v27, %v874_v26 }
 0x2a5   : > { %v877_v30 = vrot.slane %v876_v29, 1  ;;  %v2765_v35 = vpop.eup %2129 }
 0x2a6   : > { %v996_v37 = vsel %vm913_vm2, %v2765_v35, 0.0 }
 0x2a7   : > { %v878_v36 = vadd.f32 %v877_v30, %v876_v29 }
 0x2a9   : > { %v2763_v33 = vsel %vm1018_vm7, %v878_v36, %v1017_v56 }
 0x2bb   : > { %997 = vadd.xlane.f32.xlu0 %v996_v37 }
 0x307   : > { %v2769_v44 = vpop.xlane.xlu1 %1177 }
 0x308   : > { %v1179_v38 = vsub.f32 %v2742_v60, %v2769_v44 }
 0x30a   : > { %v1180_v34 = vmul.f32 1.442695, %v1179_v38 }
 0x30b   : > { %v764_v51 = vpop.permute.xlu1 %763  ;;  %v1345_v52 = vpop.xlane.xlu0 %1344 }
 0x30c   : > { %v799_v55 = vmul.f32 %v764_v51, %v615_v48  ;;  %v1346_v56 = vsub.f32 %v2746_v1, %v1345_v52  ;;  %v882_v1 = vsel %vm429_vm1, %v795_v59, 0.0 }
 0x30d   : > { %v883_v15 = vadd.f32 %v882_v1, %v881_v7 }
 0x30e   : > { %v895_v3 = vsel %vm429_vm1, %v799_v55, 0.0  ;;  %v1347_v62 = vmul.f32 1.442695, %v1346_v56  ;;  %v1619_v56 = vld [vmem:[#allocation10 + $0x18] sm:$0xff] }
 0x30f   : > { %v768_v2 = vpop.permute.xlu1 %767  ;;  %v1512_v4 = vpop.xlane.xlu0 %1511  ;;  %v896_v8 = vadd.f32 %v895_v3, %v894_v63  ;;  %2016 = vmatpush3.msra.mxu0 %v1619_v56 }
 0x310   : > { %2131 = vpow2.f32 %v1347_v62  ;;  %v800_v6 = vmul.f32 %v768_v2, %v616_v58  ;;  %v1513_v32 = vsub.f32 %v2750_v5, %v1512_v4  ;;  %2017 = vmatprep.subr.mxu0 %v2388_v0  ;;  %v1617_v58 = vld [vmem:[#allocation10 + $0x8] sm:$0xff] }
 0x311   : > { %2018 = vmatpush3.msra.mxu0 %v1618_v57 }
 0x312   : > { %v897_v10 = vsel %vm429_vm1, %v800_v6, 0.0  ;;  %v1514_v11 = vmul.f32 1.442695, %v1513_v32  ;;  %2019 = vmatprep.subr.mxu0 %v2388_v0 }
 0x313   : > { %v898_v12 = vadd.f32 %v897_v10, %v896_v8  ;;  %v749_v13 = vpop.permute.xlu0 %748  ;;  %2020 = vmatpush3.msra.mxu0 %v1617_v58 }
 0x314   : > { %2133 = vpow2.f32 %v1514_v11  ;;  %v796_v14 = vmul.f32 %v749_v13, %v612_v9  ;;  %2021 = vmatprep.subr.mxu0 %v2388_v0 }
 0x315   : > { %v899_v16 = vrot.slane %v898_v12, 4  ;;  %2135 = vpow2.f32 %v1180_v34  ;;  %2022 = vmatpush3.msra.mxu0 %v1616_v25 }
 0x316   : > { %v884_v17 = vsel %vm429_vm1, %v796_v14, 0.0 }
 0x317   : > { %v900_v18 = vadd.f32 %v899_v16, %v898_v12  ;;  %v885_v19 = vadd.f32 %v884_v17, %v883_v15 }
 0x319   : > { %v901_v20 = vrot.slane %v900_v18, 2  ;;  %v886_v5 = vrot.slane %v885_v19, 4 }
 0x31b   : > { %v887_v21 = vadd.f32 %v886_v5, %v885_v19  ;;  %v902_v39 = vadd.f32 %v901_v20, %v900_v18 }
 0x31d   : > { %v2132_v22 = vpop.eup %2131  ;;  %v888_v61 = vrot.slane %v887_v21, 2  ;;  %v903_v26 = vrot.slane %v902_v39, 1 }
 0x31e   : > { %v1349_v23 = vsel %vm913_vm2, %v2132_v22, 0.0 }
 0x31f   : > { %v889_v24 = vadd.f32 %v888_v61, %v887_v21  ;;  %1350 = vadd.xlane.f32.xlu0 %v1349_v23  ;;  %v904_v31 = vadd.f32 %v903_v26, %v902_v39 }
 0x321   : > { %v2134_v27 = vpop.eup %2133  ;;  %v890_v28 = vrot.slane %v889_v24, 1 }
 0x322   : > { %v1516_v29 = vsel %vm913_vm2, %v2134_v27, 0.0  ;;  %v2136_v41 = vpop.eup %2135 }
 0x323   : > { %v891_v30 = vadd.f32 %v890_v28, %v889_v24  ;;  %1517 = vadd.xlane.f32.xlu0 %v1516_v29  ;;  %v1182_v42 = vsel %vm913_vm2, %v2136_v41, 0.0 }
 0x325   : > { %v1021_v36 = vsel %vm1020_vm8, %v891_v30, %v2763_v33 }
 0x326   : > { %v1023_v37 = vsel %vm1022_vm9, %v904_v31, %v1021_v36 }
 0x327   : > { %1189 = vrot.lane.b32.xlu1 %v1023_v37, %s2391_s28  ;;  %1981 = vmatpush3.msra.mxu1 %v1023_v37  ;;  %s2396_s28 = smov [#allocation12]  }
 0x328   : > { %1990 = vmatprep.subr.mxu1 %v2388_v0 }
 0x339   : > { %1356 = vrot.lane.b32.xlu0 %v1023_v37, %s2390_s27  ;;  %s2277_s27 = scalar_lea.vmem %s2830_s6, 512 }
 0x33a   : > { %p2278_p8 = scmp.ne.s32.totalorder %s2830_s6, %s2277_s27 }
 0x33c   : > { %p2279_p10 = pnand %p2278_p8, %p2938_p7 }
 0x33e   : > { %p2280_p0 = pneg %p2279_p10 }
 0x344   : > { %v998_v40 = vpop.xlane.xlu0 %997 }
 0x345   : > { %2137 = vrcp.f32 %v998_v40 }
 0x34b   : > { %1183 = vadd.xlane.f32.xlu1 %v1182_v42 }
 0x352   : > { %v2138_v33 = vpop.eup %2137 }
 0x353   : > { %v1000_v43 = vmul.f32 %v2138_v33, %v2765_v35 }
 0x355   : > { %1001 = vst.msk [vmem:[%s2794_s18] sm:$0xff] %vm913_vm2, %v1000_v43  ;;  %1983 = vmatmul.mubr.msk.f32.vlgmr.msra.gmra.mxu1 %vm913_vm2, %v1000_v43 }
 0x356   : > { %1992 = vmatprep.mubr.msk.f32.mxu1 %vm2389_vm0, %v2388_v0 }
 0x35c   : > { %1523 = vrot.lane.b32.xlu1 %v1023_v37, %s2392_s22  ;;  %s2281_s22 = sshll.u32 %s2396_s28, 4  ;;  %s2282_s22 = int_to_ptr.vmem [resolvable:$false] %s2281_s22 }
 0x35d   : > { %s2283_s21 = scalar_lea.vmem %s2282_s22, 1024  ;;  %p2284_p12 = scmp.lt.s32.totalorder %s2830_s6, %s2282_s22 }
 0x35e   : > { %p2285_p2 = scmp.lt.s32.totalorder %s2283_s21, %s2277_s27 }
 0x360   : > { %p2286_p9 = por %p2285_p2, %p2284_p12 }
 0x362   : > { %p2287_p11 = pnand %p2286_p9, %p2280_p0 }
 0x399   : > { %v1190_v60 = vpop.permute.xlu1 %1189 }
 0x39a   : > { %1991 = vmatpush3.msra.mxu1 %v1190_v60 }
 0x39b   : > { %2000 = vmatprep.subr.mxu1 %v2388_v0 }
 0x3a8   : > { %v1351_v35 = vpop.xlane.xlu0 %1350 }
 0x3a9   : > { %2139 = vrcp.f32 %v1351_v35 }
 0x3ac   : > { %v1518_v44 = vpop.xlane.xlu0 %1517 }
 0x3ad   : > { %2141 = vrcp.f32 %v1518_v44 }
 0x3b0   : > { %v1357_v52 = vpop.permute.xlu0 %1356 }
 0x3b6   : > { %v2140_v45 = vpop.eup %2139 }
 0x3b7   : > { %v1353_v46 = vmul.f32 %v2140_v45, %v2132_v22 }
 0x3b9   : > { %1906 = vst.msk [vmem:[%s2794_s18 + $0x10] sm:$0xff] %vm913_vm2, %v1353_v46 }
 0x3ba   : > { %v2142_v47 = vpop.eup %2141 }
 0x3bb   : > { %v1520_v48 = vmul.f32 %v2142_v47, %v2134_v27 }
 0x3bd   : > { %1910 = vst.msk [vmem:[%s2794_s18 + $0x18] sm:$0xff] %vm913_vm2, %v1520_v48 }
 0x3d4   : > { %v1184_v49 = vpop.xlane.xlu1 %1183 }
 0x3d5   : > { %2143 = vrcp.f32 %v1184_v49 }
 0x3d8   : > { %v1524_v53 = vpop.permute.xlu1 %1523 }
 0x3e2   : > { %v2144_v50 = vpop.eup %2143 }
 0x3e3   : > { %v1186_v51 = vmul.f32 %v2144_v50, %v2136_v41 }
 0x3e5   : > { %1902 = vst.msk [vmem:[%s2794_s18 + $0x8] sm:$0xff] %vm913_vm2, %v1186_v51  ;;  %1993 = vmatmul.mubr.msk.f32.vlgmr.msra.gmra.mxu1 %vm913_vm2, %v1186_v51 }
 0x3e6   : > { %2001 = vmatpush3.msra.mxu1 %v1357_v52  ;;  %2002 = vmatprep.mubr.msk.f32.mxu1 %vm2389_vm0, %v2388_v0 }
 0x3e7   : > { %2010 = vmatprep.subr.mxu1 %v2388_v0 }
 0x3e9   : > { %2003 = vmatmul.mubr.msk.f32.vlgmr.msra.gmra.mxu1 %vm913_vm2, %v1353_v46 }
 0x3ea   : > { %2011 = vmatpush3.msra.mxu1 %v1524_v53  ;;  %2012 = vmatprep.mubr.msk.f32.mxu1 %vm2389_vm0, %v2388_v0 }
 0x3ed   : > { %2013 = vmatmul.mubr.msk.f32.vlgmr.msra.gmra.mxu1 %vm913_vm2, %v1520_v48 }
 0x415   : > { %v1094_v54 = vpop.f32.mrf.mxu1 }
 0x417   : > { %v1984_v55 = vpop.f32.mrf.mxu1 }
 0x4a5   : > { %v1261_v59 = vpop.f32.mrf.mxu1 }
 0x4a6   : > { %1600 = vrot.lane.b32.xlu1 %v1261_v59, %s2393_s19 }
 0x4a7   : > { %v1994_v3 = vpop.f32.mrf.mxu1 }
 0x4a9   : > { %v1428_v62 = vpop.f32.mrf.mxu1 }
 0x4aa   : > { %1604 = vrot.lane.b32.xlu0 %v1428_v62, %s2394_s13 }
 0x4ab   : > { %v2004_v63 = vpop.f32.mrf.mxu1 }
 0x4ad   : > { %v1595_v2 = vpop.f32.mrf.mxu1 }
 0x4ae   : > { %1608 = vrot.lane.b32.xlu1 %v1595_v2, %s2395_s24 }
 0x4af   : > { %v2014_v4 = vpop.f32.mrf.mxu1 }
 0x518   : > { %v1601_v6 = vpop.permute.xlu1 %1600 }
 0x519   : > { %v1611_v32 = vsel %vm913_vm2, %v1094_v54, %v1601_v6 }
 0x51c   : > { %v1605_v0 = vpop.permute.xlu0 %1604 }
 0x51d   : > { %v1613_v7 = vsel %vm1612_vm10, %v1611_v32, %v1605_v0 }
 0x520   : > { %v1609_v8 = vpop.permute.xlu1 %1608 }
 0x521   : > { %v1615_v9 = vsel %vm1614_vm11, %v1613_v7, %v1609_v8 }
 0x522   : > { %2024 = vmatmul.mubr.msk.f32.vlgmr.msra.gmra.mxu0 %vm429_vm1, %v1615_v9 }
 0x523   : > { %2290 = shalt.err (!%p2287_p11)
}
 0x524   : > { %s2291_s18 = scalar_lea.hbm %s2828_s23, 512  ;;  %s2295_s5 = scalar_lea.hbm %s2912_s9, 1024 }
 0x525   : > { %p2292_p13 = scmp.ne.s32.totalorder %s2828_s23, %s2291_s18  ;;  %p2296_p4 = scmp.lt.s32.totalorder %s2828_s23, %s2912_s9 }
 0x526   : > { %p2297_p6 = scmp.lt.s32.totalorder %s2295_s5, %s2291_s18 }
 0x527   : > { %p2293_p1 = pnand %p2292_p13, %p2938_p7 }
 0x528   : > { %p2298_p5 = por %p2297_p6, %p2296_p4 }
 0x529   : > { %p2294_p3 = pneg %p2293_p1 }
 0x52b   : > { %p2299_p8 = pnand %p2298_p5, %p2294_p3 }
 0x52d   : > { %2302 = shalt.err (!%p2299_p8)
}
 0x52e   : > { %s2397_s27 = smov 128   ;;  %v1912_v1 = vld [vmem:[%s2910_s7] ss:$0 sm:$0xff]  ;;  %s1916_s21 = sshll.u32 %s2470_s15, 7 }
 0x52f   : > { %2045 = dma.vmem_to_hbm [thread:$0]  (%p2938_p7), %s2830_s6, 512, %s2828_s23, %s1707_s25, %s2397_s27, %s2397_s27, %s2393_s19  }
 0x530   : > { %s409_s18 = scalar_lea.vmem [#allocation11], %s1886_s20  ;;  %s2865_s1 = scalar_lea.hbm %s2911_s8, %s1916_s21 }
 0x531   : > { %s1720_s13 = sshll.u32 %s409_s18, 4  ;;  %s1702_s19 = scalar_lea.sflag [#allocation4], %s2613_s2  ;;  %s1721_s13 = int_to_ptr.vmem [resolvable:$true] %s1720_s13 }
 0x532   : > { %s2303_s6 = scalar_lea.vmem %s1721_s13, 128  ;;  %s2398_s15 = smov [#allocation11]  }
 0x533   : > { %p2304_p10 = scmp.ne.s32.totalorder %s1721_s13, %s2303_s6  ;;  %s2307_s20 = sshll.u32 %s2398_s15, 4  ;;  %s2308_s20 = int_to_ptr.vmem [resolvable:$false] %s2307_s20 }
 0x534   : > { %s2309_s23 = scalar_lea.vmem %s2308_s20, 256  ;;  %p2310_p2 = scmp.lt.s32.totalorder %s1721_s13, %s2308_s20 }
 0x535   : > { %p2305_p0 = pnand %p2304_p10, %p2938_p7  ;;  %p2311_p9 = scmp.lt.s32.totalorder %s2309_s23, %s2303_s6 }
 0x537   : > { %p2306_p12 = pneg %p2305_p0  ;;  %p2312_p11 = por %p2311_p9, %p2310_p2 }
 0x539   : > { %p2313_p13 = pnand %p2312_p11, %p2306_p12 }
 0x5e2   : > { %v1696_v10 = vpop.f32.mrf.mxu0 }
 0x5e3   : > { %v1697_v11 = vadd.f32 %v1912_v1, %v1696_v10 }
 0x5e4   : > { %v2025_v12 = vpop.f32.mrf.mxu0 }
 0x5e5   : > { %1700 = vst.msk [vmem:[%s409_s18] sm:$0xff] %vm429_vm1, %v1697_v11 }
 0x5e6   : > { %2316 = shalt.err (!%p2313_p13)
}
 0x5e7   : > { %s2317_s25 = scalar_lea.hbm %s2865_s1, 128  ;;  %s2321_s27 = scalar_lea.hbm %s2911_s8, 256 }
 0x5e8   : > { %p2318_p1 = scmp.ne.s32.totalorder %s2865_s1, %s2317_s25  ;;  %p2322_p6 = scmp.lt.s32.totalorder %s2865_s1, %s2911_s8 }
 0x5e9   : > { %p2323_p5 = scmp.lt.s32.totalorder %s2321_s27, %s2317_s25 }
 0x5ea   : > { %p2319_p3 = pnand %p2318_p1, %p2938_p7 }
 0x5eb   : > { %p2324_p8 = por %p2323_p5, %p2322_p6 }
 0x5ec   : > { %p2320_p4 = pneg %p2319_p3 }
 0x5ee   : > { %p2325_p10 = pnand %p2324_p8, %p2320_p4 }
 0x5f0   : > { %2328 = shalt.err (!%p2325_p10)
}
 0x5f1   : > { %2044 = dma.vmem_to_hbm [thread:$0]  (%p2938_p7), %s1721_s13, 128, %s2865_s1, %s1702_s19  }
 0x5f2 PF: > { %s1748_s21 = sand.u32 1, %s2367_s30   ;;  %p2939_p0 = scmp.ne.s32.totalorder %s2930_s17, 0 }
 0x5f3   : > { %p2940_p12 = scmp.ge.s32.totalorder %s2379_s12, 2  ;;  %s1749_s18 = scalar_lea.sflag [#allocation4], %s1748_s21 }
 0x5f5   : > { %p2066_p2 = pnand %p2940_p12, %p2939_p0 }
 0x5f7   : > { %p2067_p9 = pneg %p2066_p2 }
 0x5f9   : > { %2358 = dma.done.wait (%p2067_p9), %s1749_s18, 128  }
 0x5fa   : > { %2360 = vsyncadd (%p2067_p9), %s1749_s18, 4294967168  ;;  %s1758_s24 = scalar_lea.sflag [#allocation13], %s1748_s21 }
 0x5fb   : > { %2362 = dma.done.wait (%p2067_p9), %s1758_s24, 512  }
 0x5fc   : > { %2364 = vsyncadd (%p2067_p9), %s1758_s24, 4294966784  ;;  %p28_p7 = scmp.ge.s32.totalorder %s2550_s26, 4   ;;  %s2941_s30 = smov %s2371_s10 }
 0x5fd   : > { %s2942_s10 = smov %s2375_s11  ;;  %s2943_s11 = smov %s2561_s29 }
 0x5fe   : > { %s2944_s12 = smov %s2550_s26  ;;  %30 = sbr.rel (!%p28_p7) target bundleno = 14 (0xe), region = 133 }
 0x603   :  { %1763 = vsyncpa [#allocation3], 1 }
 0x604   :  { %1765 = vsyncpa [#allocation3 + $0x1], 1 }
 0x605   :  { %1766 = vsyncpa [#allocation6], 1 }
 0x606   :  { %1767 = vsyncpa [#allocation9], 1 }
 0x607   :  { %1768 = vsyncpa [#allocation4], 1 }
 0x608   :  { %1770 = vsyncpa [#allocation4 + $0x1], 1 }
 0x609   :  { %1771 = vsyncpa [#allocation13], 1 }
 0x60a   :  { %1773 = vsyncpa [#allocation13 + $0x1], 1 }

</bundles_post_ra>
